<compile_context>
chip_gen: v7x
topology: tpu7x:2x2x1
jax: 0.10.0
libtpu: 0.0.40
codegen_flags: <defaults>
</compile_context>

<pallas_src>
import jax
import jax.numpy as jnp
from jax.experimental import pallas as pl
from jax.experimental.pallas import tpu as pltpu


def decoder_kernel(z_ref, w1_ref, b1_ref, w2_ref, b2_ref, out_ref):
    # Lane-dense layout: features on sublanes, batch on lanes.
    #   z_ref : (latent_dim, tb)
    #   w1    : (nhidden, latent_dim)   b1 : (nhidden, 1)
    #   w2    : (obs_dim, nhidden)      b2 : (obs_dim, 1)
    h = jnp.dot(w1_ref[...], z_ref[...],
                preferred_element_type=jnp.float32)           # (nhidden, tb)
    h = jnp.maximum(h + b1_ref[...], 0.0)                      # bias + ReLU, f32
    out = jnp.dot(w2_ref[...], h,
                  preferred_element_type=jnp.float32)          # (obs_dim, tb)
    out_ref[...] = (out + b2_ref[...]).astype(out_ref.dtype)


def decoder_forward(z, w1, b1, w2, b2, *, block_b=8192):
    """y = relu(z @ w1.T + b1) @ w2.T + b2  (matches PyTorch Decoder.forward).

    z  : (..., latent_dim)  -- all leading dims folded into one batch axis
    w1 : (nhidden, latent_dim),  b1 : (nhidden,)
    w2 : (obs_dim, nhidden),     b2 : (obs_dim,)
    """
    *lead, latent_dim = z.shape
    nhidden = w1.shape[0]
    obs_dim = w2.shape[0]

    # Batch on lanes: (latent_dim, B).
    zt = z.reshape(-1, latent_dim).T
    B = zt.shape[1]

    if B <= block_b:
        tb = B                           # single block == full lane extent
    else:
        tb = -(-block_b // 128) * 128    # lane tile: multiple of 128
    grid = (pl.cdiv(B, tb),)             # ragged last block handled by Pallas

    b1_col = b1.reshape(nhidden, 1)
    b2_col = b2.reshape(obs_dim, 1)

    flops = 2 * B * (latent_dim * nhidden + nhidden * obs_dim)
    bytes_accessed = 4 * (B * (latent_dim + obs_dim)
                          + w1.size + b1.size + w2.size + b2.size)

    out_t = pl.pallas_call(
        decoder_kernel,
        out_shape=jax.ShapeDtypeStruct((obs_dim, B), z.dtype),
        grid=grid,
        in_specs=[
            pl.BlockSpec((latent_dim, tb), lambda i: (0, i)),       # z tile
            pl.BlockSpec((nhidden, latent_dim), lambda i: (0, 0)),  # resident w1
            pl.BlockSpec((nhidden, 1), lambda i: (0, 0)),           # resident b1
            pl.BlockSpec((obs_dim, nhidden), lambda i: (0, 0)),     # resident w2
            pl.BlockSpec((obs_dim, 1), lambda i: (0, 0)),           # resident b2
        ],
        out_specs=pl.BlockSpec((obs_dim, tb), lambda i: (0, i)),
        compiler_params=pltpu.CompilerParams(
            dimension_semantics=("parallel",),   # shard batch tiles on v7x's 2 TCs
        ),
        cost_estimate=pl.CostEstimate(
            flops=flops, transcendentals=0, bytes_accessed=bytes_accessed),
    )(zt, w1, b1_col, w2, b2_col)

    return out_t.T.reshape(*lead, obs_dim)


decoder_forward_jit = jax.jit(decoder_forward, static_argnames=("block_b",))


def init_linear_params(key, out_features, in_features, dtype=jnp.float32):
    """Deterministic init mimicking PyTorch nn.Linear defaults
    (uniform(-1/sqrt(fan_in), 1/sqrt(fan_in)) for weight and bias)."""
    kw, kb = jax.random.split(key)
    bound = 1.0 / (in_features ** 0.5)
    w = jax.random.uniform(kw, (out_features, in_features), dtype,
                           minval=-bound, maxval=bound)
    b = jax.random.uniform(kb, (out_features,), dtype,
                           minval=-bound, maxval=bound)
    return w, b


def _reference(z, w1, b1, w2, b2):
    h = jnp.maximum(jnp.dot(z, w1.T, precision="highest") + b1, 0.0)
    return jnp.dot(h, w2.T, precision="highest") + b2


if __name__ == "__main__":
    latent_dim, obs_dim, nhidden = 4, 2, 20

    key = jax.random.PRNGKey(0)
    kz, kz2, k1, k2 = jax.random.split(key, 4)

    w1, b1 = init_linear_params(k1, nhidden, latent_dim)
    w2, b2 = init_linear_params(k2, obs_dim, nhidden)

    # Case 1: toy batch (single block, no padding, no ragged handling).
    z_small = jax.random.normal(kz, (8, latent_dim), jnp.float32)
    out_small = jax.block_until_ready(
        decoder_forward_jit(z_small, w1, b1, w2, b2))
    ref_small = _reference(z_small, w1, b1, w2, b2)
    assert out_small.shape == (8, obs_dim)
    assert jnp.allclose(out_small, ref_small, atol=1e-4, rtol=1e-4)

    # Case 2: many samples x time-steps folded into one batch axis
    # (B = 400 -> still a single lane-dense block with the default tile).
    z_big = jax.random.normal(kz2, (16, 25, latent_dim), jnp.float32)
    out_big = jax.block_until_ready(
        decoder_forward_jit(z_big, w1, b1, w2, b2))
    ref_big = _reference(z_big, w1, b1, w2, b2)
    assert out_big.shape == (16, 25, obs_dim)
    assert jnp.allclose(out_big, ref_big, atol=1e-4, rtol=1e-4)

    # Case 3: force a multi-step grid with a ragged last block
    # (B = 400, tb = 128 -> grid of 4, last block partially out of bounds).
    out_tiled = jax.block_until_ready(
        decoder_forward_jit(z_big, w1, b1, w2, b2, block_b=128))
    assert out_tiled.shape == (16, 25, obs_dim)
    assert jnp.allclose(out_tiled, ref_big, atol=1e-4, rtol=1e-4)

    print("KERNEL_OK")
</pallas_src>

<mosaic_0001>
module attributes {stable_mosaic.version = 11 : i64} {
  func.func @decoder_kernel(%arg0: i32, %arg1: memref<4x8xf32, #tpu.memory_space<vmem>>, %arg2: memref<20x4xf32, #tpu.memory_space<vmem>>, %arg3: memref<20x1xf32, #tpu.memory_space<vmem>>, %arg4: memref<2x20xf32, #tpu.memory_space<vmem>>, %arg5: memref<2x1xf32, #tpu.memory_space<vmem>>, %arg6: memref<2x8xf32, #tpu.memory_space<vmem>>) attributes {dimension_semantics = [#tpu.dimension_semantics<parallel>], iteration_bounds = array<i64: 1>, scalar_prefetch = 0 : i64, scratch_operands = 0 : i64, tpu.core_type = #tpu.core_type<tc>, window_params = [{transform_indices = @transform_0, window_bounds = array<i64: 4, 8>}, {pipeline_mode = #tpu.pipeline_mode<synchronous>, transform_indices = @transform_1, window_bounds = array<i64: 20, 4>}, {pipeline_mode = #tpu.pipeline_mode<synchronous>, transform_indices = @transform_2, window_bounds = array<i64: 20, 1>}, {pipeline_mode = #tpu.pipeline_mode<synchronous>, transform_indices = @transform_3, window_bounds = array<i64: 2, 20>}, {pipeline_mode = #tpu.pipeline_mode<synchronous>, transform_indices = @transform_4, window_bounds = array<i64: 2, 1>}, {transform_indices = @transform_5, window_bounds = array<i64: 2, 8>}]} {
    %c0 = arith.constant 0 : index
    %c0_0 = arith.constant 0 : index
    %0 = vector.load %arg2[%c0, %c0_0] : memref<20x4xf32, #tpu.memory_space<vmem>>, vector<20x4xf32>
    %c0_1 = arith.constant 0 : index
    %c0_2 = arith.constant 0 : index
    %1 = vector.load %arg1[%c0_1, %c0_2] : memref<4x8xf32, #tpu.memory_space<vmem>>, vector<4x8xf32>
    %cst = arith.constant dense<0.000000e+00> : vector<20x8xf32>
    %2 = tpu.matmul %0, %1, %cst {dimension_numbers = #tpu.dot_dimension_numbers<[1], [0], [0], [1], [0, 0, 1, 1], [], []>} : vector<20x4xf32>, vector<4x8xf32>, vector<20x8xf32> -> vector<20x8xf32>
    %c0_3 = arith.constant 0 : index
    %c0_4 = arith.constant 0 : index
    %3 = vector.load %arg3[%c0_3, %c0_4] : memref<20x1xf32, #tpu.memory_space<vmem>>, vector<20x1xf32>
    %4 = vector.broadcast %3 : vector<20x1xf32> to vector<20x8xf32>
    %5 = arith.addf %2, %4 : vector<20x8xf32>
    %cst_5 = arith.constant 0.000000e+00 : f32
    %6 = vector.broadcast %cst_5 : f32 to vector<20x8xf32>
    %7 = arith.maximumf %5, %6 : vector<20x8xf32>
    %c0_6 = arith.constant 0 : index
    %c0_7 = arith.constant 0 : index
    %8 = vector.load %arg4[%c0_6, %c0_7] : memref<2x20xf32, #tpu.memory_space<vmem>>, vector<2x20xf32>
    %cst_8 = arith.constant dense<0.000000e+00> : vector<2x8xf32>
    %9 = tpu.matmul %8, %7, %cst_8 {dimension_numbers = #tpu.dot_dimension_numbers<[1], [0], [0], [1], [0, 0, 1, 1], [], []>} : vector<2x20xf32>, vector<20x8xf32>, vector<2x8xf32> -> vector<2x8xf32>
    %c0_9 = arith.constant 0 : index
    %c0_10 = arith.constant 0 : index
    %10 = vector.load %arg5[%c0_9, %c0_10] : memref<2x1xf32, #tpu.memory_space<vmem>>, vector<2x1xf32>
    %11 = vector.broadcast %10 : vector<2x1xf32> to vector<2x8xf32>
    %12 = arith.addf %9, %11 : vector<2x8xf32>
    %c0_11 = arith.constant 0 : index
    %c0_12 = arith.constant 0 : index
    %13 = vector.load %arg6[%c0_11, %c0_12] : memref<2x8xf32, #tpu.memory_space<vmem>>, vector<2x8xf32>
    tpu.vector_store %arg6[%c0_11, %c0_12], %12 {strides = array<i32>} : memref<2x8xf32, #tpu.memory_space<vmem>>, vector<2x8xf32>,
    return
  }
  func.func @transform_0(%arg0: i32) -> (i32, i32) {
    %c0_i32 = arith.constant 0 : i32
    %c0_i32_0 = arith.constant 0 : i32
    return %c0_i32, %arg0 : i32, i32
  }
  func.func @transform_1(%arg0: i32) -> (i32, i32) {
    %c0_i32 = arith.constant 0 : i32
    %c0_i32_0 = arith.constant 0 : i32
    %c0_i32_1 = arith.constant 0 : i32
    return %c0_i32, %c0_i32_0 : i32, i32
  }
  func.func @transform_2(%arg0: i32) -> (i32, i32) {
    %c0_i32 = arith.constant 0 : i32
    %c0_i32_0 = arith.constant 0 : i32
    %c0_i32_1 = arith.constant 0 : i32
    return %c0_i32, %c0_i32_0 : i32, i32
  }
  func.func @transform_3(%arg0: i32) -> (i32, i32) {
    %c0_i32 = arith.constant 0 : i32
    %c0_i32_0 = arith.constant 0 : i32
    %c0_i32_1 = arith.constant 0 : i32
    return %c0_i32, %c0_i32_0 : i32, i32
  }
  func.func @transform_4(%arg0: i32) -> (i32, i32) {
    %c0_i32 = arith.constant 0 : i32
    %c0_i32_0 = arith.constant 0 : i32
    %c0_i32_1 = arith.constant 0 : i32
    return %c0_i32, %c0_i32_0 : i32, i32
  }
  func.func @transform_5(%arg0: i32) -> (i32, i32) {
    %c0_i32 = arith.constant 0 : i32
    %c0_i32_0 = arith.constant 0 : i32
    return %c0_i32, %arg0 : i32, i32
  }
}

</mosaic_0001>

<bundles_post_ra>
// kernel: decoder_forward.1
= control target key start
LH: loop header
LB: loop body
LE: loop exit
PB: predicated region body
PF: predicated region fallthrough
CT: control target
= control target key end

     0   :  { %vm53_vm0 = vcmask 1043456   ;;  %v308_v2 = vmov 0.0   ;;  %vm309_vm1 = vmmov 0   ;;  %vm43_vm2 = vcmask 31744   ;;  %s391_s0 = inlined_call_operand.vmem [shape: f32[4,8], index: 0, kind: input, shape index: {}]   ;;  %s392_s1 = inlined_call_operand.vmem [shape: f32[20,4], index: 1, kind: input, shape index: {}]   ;;  %s393_s2 = inlined_call_operand.vmem [shape: f32[20,1], index: 2, kind: input, shape index: {}]   ;;  %s394_s3 = inlined_call_operand.vmem [shape: f32[2,20], index: 3, kind: input, shape index: {}]   ;;  %s395_s4 = inlined_call_operand.vmem [shape: f32[2,1], index: 4, kind: input, shape index: {}]   ;;  %s396_s5 = inlined_call_operand.hbm [shape: f32[2,8], index: 5, kind: output, shape index: {}]  }
   0x1   :  { %v24_v0 = vld [vmem:[%s391_s0] sm:$0xf]  ;;  %254 = vmatprep.subr.mxu0 %v308_v2  ;;  %256 = vmatprep.mubr.msk.f32.mxu0 %vm309_vm1, %v308_v2  ;;  %v310_v4 = vmov 0   ;;  %v27_v5 = vld [vmem:[%s393_s2 + $0x10] sm:$0xf] }
   0x2   :  { %v21_v1 = vld [vmem:[%s392_s1] sm:$0xff]  ;;  %255 = vmatpush3.msk.msra.mxu0 %vm53_vm0, %v24_v0  ;;  %282 = vset.pattern.permute.xlu0 %v310_v4 }
   0x3   :  { %v25_v3 = vld [vmem:[%s393_s2] sm:$0xff]  ;;  %257 = vmatmul.mubr.msk.f32.vlgmr.msra.gmra.mrb[0].mxu0 %vm43_vm2, %v21_v1 }
   0x4   :  { %30 = vperm.xlu0 %282, %v25_v3  }
   0x5   :  { %10 = vsyncpa [#allocation3], 0  ;;  %259 = vmatprep.mubr.msk.f32.mxu0 %vm309_vm1, %v308_v2  ;;  %v22_v6 = vld [vmem:[%s392_s1 + $0x8] sm:$0xff]  ;;  %283 = vset.pattern.permute.xlu1 %v310_v4  ;;  %v141_v8 = vld [vmem:[%s395_s4] sm:$0x3]  ;;  %v311_v10 = vmov 0.0|0.0  }
   0x6   :  { %v26_v7 = vld [vmem:[%s393_s2 + $0x8] sm:$0xff]  ;;  %40 = vperm.xlu1 %283, %v27_v5   ;;  %271 = vmatprep.mubr.msk.f32.mxu1 %vm309_vm1, %v308_v2  ;;  %v23_v9 = vld [vmem:[%s392_s1 + $0x10] sm:$0xf]  ;;  %v140_v27 = vld [vmem:[%s394_s3] sm:$0x3]  ;;  %vm147_vm3 = vcmask 162816  }
   0x7   :  { %260 = vmatmul.mubr.msk.f32.gmra.mrb[2].mxu0 %vm43_vm2, %v22_v6  ;;  %274 = vmatprep.subr.bf16.mxu1 %v311_v10  ;;  %s312_s4 = smov [#allocation2]   ;;  %vm224_vm4 = vcmask 58368  }
   0x8   :  { %35 = vperm.xlu0 %282, %v26_v7   ;;  %262 = vmatprep.mubr.msk.f32.mxu0 %vm309_vm1, %v308_v2  ;;  %s232_s8 = sshll.u32 %s312_s4, 4  ;;  %s233_s8 = int_to_ptr.vmem [resolvable:$true] %s232_s8 }
   0x9   :  { %s284_s9 = scalar_lea.vmem %s233_s8, 32  ;;  %p289_p1 = scmp.lt.s32.totalorder %s233_s8, %s233_s8 }
   0xa   :  { %144 = vperm.xlu1 %283, %v141_v8   ;;  %p285_p0 = scmp.ne.s32.totalorder %s233_s8, %s284_s9  ;;  %p290_p2 = scmp.lt.s32.totalorder %s284_s9, %s284_s9 }
   0xb   :  { %263 = vmatmul.mubr.msk.f32.gmra.mrb[4].mxu0 %vm43_vm2, %v23_v9 }
   0xc   :  { %p291_p3 = por %p290_p2, %p289_p1 }
   0xe   :  { %p292_p4 = pnand %p291_p3, %p285_p0 }
  0x83   :  { %v31_v11 = vpop.permute.xlu0 %30 }
  0x85   :  { %v41_v21 = vpop.permute.xlu1 %40 }
  0x87   :  { %v36_v15 = vpop.permute.xlu0 %35 }
  0x89   :  { %v145_v28 = vpop.permute.xlu1 %144 }
  0xd6   :  { %v123_v12 = vpop.f32.mrb[0].mxu0 }
  0xd7   :  { %v258_v13 = vpop.f32.mrb[1].mxu0  ;;  %v124_v14 = vadd.f32 %v123_v12, %v31_v11 }
  0xd9   :  { %v137_v19 = vmax.f32 %v124_v14, 0.0 }
  0xda   :  { %v128_v16 = vpop.f32.mrb[2].mxu0 }
  0xdb   :  { %v129_v17 = vadd.f32 %v128_v16, %v36_v15  ;;  %v261_v18 = vpop.f32.mrb[3].mxu0 }
  0xdd   :  { %v138_v20 = vmax.f32 %v129_v17, 0.0 }
  0xde   :  { %v133_v22 = vpop.f32.mrb[4].mxu0 }
  0xdf   :  { %v134_v23 = vadd.f32 %v133_v22, %v41_v21  ;;  %v264_v24 = vpop.f32.mrb[5].mxu0  ;;  %v275_v25 = vpack.c.bf16 %v138_v20, %v137_v19 }
  0xe1   :  { %v139_v26 = vmax.f32 %v134_v23, 0.0  ;;  %276 = vmatpush3.bf16.msra.mxu1 %v275_v25 }
  0xe2   :  { %269 = vmatprep.subr.mxu1 %v308_v2 }
  0xe5   :  { %270 = vmatpush3.msk.msra.mxu1 %vm53_vm0, %v139_v26 }
  0xe6   :  { %272 = vmatmul.mubr.msk.f32.vlgmr.msra.gmra.mrb[0].mxu1 %vm147_vm3, %v140_v27 }
 0x1b9   :  { %v220_v29 = vpop.f32.mrb[0].mxu1 }
 0x1ba   :  { %v221_v30 = vadd.f32 %v220_v29, %v145_v28  ;;  %v273_v31 = vpop.f32.mrb[1].mxu1 }
 0x1bc   :  { %225 = vst.msk [vmem:[#allocation2] sm:$0x3] %vm224_vm4, %v221_v30 }
 0x1bd   :  { %295 = shalt.err (!%p292_p4)
}
 0x1be   :  { %s296_s11 = scalar_lea.hbm %s396_s5, 32 }
 0x1bf   :  { %p297_p5 = scmp.ne.s32.totalorder %s396_s5, %s296_s11  ;;  %p300_p6 = scmp.lt.u32.totalorder %s296_s11, %s396_s5 }
 0x1c1   :  { %p302_p7 = pnand %p300_p6, %p297_p5 }
 0x1c3   :  { %305 = shalt.err (!%p302_p7)
}
 0x1c4   :  { %235 = dma.vmem_to_hbm [thread:$0]  %s233_s8, 32, %s396_s5, [#allocation3]  }
 0x1c5   :  { %306 = dma.done.wait [#allocation3], 32  }
 0x1c6   :  { %307 = vsyncadd [#allocation3], 4294967264 }
 0x1c7   :  { %239 = vsyncpa [#allocation3], 1 }

</bundles_post_ra>
